<compile_context>
chip_gen: v7x
topology: tpu7x:2x2x1
jax: 0.10.0
libtpu: 0.0.40
codegen_flags: <defaults>
</compile_context>

<pallas_src>
import math

import jax
import jax.numpy as jnp
from jax.experimental import pallas as pl
from jax.experimental.pallas import tpu as pltpu


_LANE_TARGET = 512  # target lane width per grid step (>=512-wide tiles)


def _choose_lane_block(batch, num_node):
    """Lane-block width TL = TB*num_node.

    TL is batch-aligned (multiple of num_node) and, when the lane axis is
    actually tiled, also 128-aligned so every BlockSpec satisfies the (8,128)
    layout rule.  Small problems get a single full-width block.
    """
    L = batch * num_node
    if L <= _LANE_TARGET:
        return L                                          # single full block
    unit = (num_node * 128) // math.gcd(num_node, 128)    # lcm(num_node, 128)
    if unit > 2 * _LANE_TARGET:
        # num_node does not tile nicely against the 128-lane axis; fall back
        # to one full-width block (still correct; fine for LightTS sizes).
        return L
    return unit * max(1, _LANE_TARGET // unit)


def prepare_params(params, batch):
    """One-time weight repack, hoisted out of the jitted forward."""
    w1, b1, w2, b2, wc, bc, wo, bo = params               # raw PyTorch layouts
    H, _ = w1.shape
    H4 = w2.shape[0]
    O = wo.shape[0]
    N = wc.shape[0]

    TL = _choose_lane_block(batch, N)
    TB = TL // N

    # channel_proj with the residual folded in:  y = h2 @ (Wc^T + I) + bc
    wcit = wc.T + jnp.eye(N, dtype=wc.dtype)               # (N, N)
    # Per-batch node mixing as one dense 2-D matmul over the folded lane axis.
    wbd = jnp.kron(jnp.eye(TB, dtype=wc.dtype), wcit)      # (TL, TL)
    bct = jnp.tile(bc.reshape(1, N), (1, TB))              # (1, TL)

    return (w1, b1.reshape(H, 1), w2, b2.reshape(H4, 1),
            wbd, bct, wo, bo.reshape(O, 1))


def ieblock_kernel(x_ref, w1_ref, b1_ref, w2_ref, b2_ref,
                   wbd_ref, bc_ref, wo_ref, bo_ref, o_ref):
    """One grid step = one lane block of TL = TB*num_node columns.

    x_ref   : (Din, TL)  input slab; columns ordered (batch-major, node-minor)
    w1_ref  : (H,  Din)  spatial_proj[0].weight      b1_ref: (H, 1)
    w2_ref  : (H4, H)    spatial_proj[2].weight      b2_ref: (H4, 1)
    wbd_ref : (TL, TL)   kron(I_TB, Wc^T + I)        bc_ref: (1, TL)
    wo_ref  : (O,  H4)   output_proj.weight          bo_ref: (O, 1)
    o_ref   : (O,  TL)
    """
    f32 = jnp.float32
    x = x_ref[...]                                                  # (Din, TL)

    # spatial_proj: Linear -> LeakyReLU(0.01) -> Linear (contract features).
    h = jnp.dot(w1_ref[...], x, preferred_element_type=f32) + b1_ref[...]
    h = jnp.maximum(h, 0.01 * h)                                    # LeakyReLU
    h = jnp.dot(w2_ref[...], h.astype(w2_ref.dtype),
                preferred_element_type=f32) + b2_ref[...]           # (H4, TL)

    # channel mixing over nodes (residual folded into the block-diag weight).
    y = jnp.dot(h.astype(wbd_ref.dtype), wbd_ref[...],
                preferred_element_type=f32) + bc_ref[...]           # (H4, TL)

    # output_proj (contract features).
    out = jnp.dot(wo_ref[...], y.astype(wo_ref.dtype),
                  preferred_element_type=f32) + bo_ref[...]         # (O, TL)
    o_ref[...] = out.astype(o_ref.dtype)


@jax.jit
def ieblock_forward(x, prepped):
    """x: (B, input_dim, num_node) -> (B, output_dim, num_node)."""
    w1, b1c, w2, b2c, wbd, bct, wo, boc = prepped
    B, Din, N = x.shape
    H = w1.shape[0]
    H4 = w2.shape[0]
    O = wo.shape[0]
    TL = wbd.shape[0]
    L = B * N
    itemsize = jnp.dtype(x.dtype).itemsize

    # Lane-dense 2-D layout: (feature, batch*node).  Pure layout plumbing done
    # by XLA outside the kernel.
    x2d = jnp.transpose(x, (1, 0, 2)).reshape(Din, L)

    # VMEM budget: double-buffered x/out slabs + weights + live intermediates,
    # with generous headroom, capped below v7x's 64 MiB physical VMEM.
    est = itemsize * (2 * (Din + O) * TL                              # I/O blocks
                      + 2 * (H * Din + H4 * H + TL * TL + O * H4)     # weights
                      + (H + 2 * H4 + O + 4) * TL)                    # intermediates
    vmem_limit = int(min(56 << 20, max(32 << 20, 4 * est)))

    const = lambda shape: pl.BlockSpec(shape, lambda i: (0,) * len(shape))

    out2d = pl.pallas_call(
        ieblock_kernel,
        out_shape=jax.ShapeDtypeStruct((O, L), x.dtype),
        grid=(pl.cdiv(L, TL),),
        in_specs=[
            pl.BlockSpec((Din, TL), lambda i: (0, i)),
            const((H, Din)), const((H, 1)),
            const((H4, H)), const((H4, 1)),
            const((TL, TL)), const((1, TL)),
            const((O, H4)), const((O, 1)),
        ],
        out_specs=pl.BlockSpec((O, TL), lambda i: (0, i)),
        compiler_params=pltpu.CompilerParams(
            dimension_semantics=("parallel",),
            vmem_limit_bytes=vmem_limit),
    )(x2d, w1, b1c, w2, b2c, wbd, bct, wo, boc)

    # Back to PyTorch convention (B, output_dim, num_node).
    return jnp.transpose(out2d.reshape(O, B, N), (1, 0, 2))


def init_params(key, input_dim, hid_dim, output_dim, num_node, dtype=jnp.float32):
    """Synthetic init mirroring IEBlock._build(), raw PyTorch layouts."""
    h4 = hid_dim // 4
    k1, k2, k3, k4, k5, k6, k7 = jax.random.split(key, 7)

    def unif(k, shape, fan_in):
        bound = 1.0 / jnp.sqrt(jnp.float32(fan_in))
        return jax.random.uniform(k, shape, dtype, minval=-bound, maxval=bound)

    w1 = unif(k1, (hid_dim, input_dim), input_dim)     # spatial_proj[0]
    b1 = unif(k2, (hid_dim,), input_dim)
    w2 = unif(k3, (h4, hid_dim), hid_dim)              # spatial_proj[2]
    b2 = unif(k4, (h4,), hid_dim)
    wc = jnp.eye(num_node, dtype=dtype)                # channel_proj, eye_ init
    bc = unif(k5, (num_node,), num_node)
    wo = unif(k6, (output_dim, h4), h4)                # output_proj
    bo = unif(k7, (output_dim,), h4)
    return (w1, b1, w2, b2, wc, bc, wo, bo)


def ieblock_reference(x, params):
    """Pure-JAX reference of the PyTorch forward, for correctness checking."""
    w1, b1, w2, b2, wc, bc, wo, bo = params
    xp = jnp.transpose(x, (0, 2, 1))                   # (B, N, Din)
    h = xp @ w1.T + b1
    h = jnp.where(h >= 0, h, 0.01 * h)                 # LeakyReLU(0.01)
    h = h @ w2.T + b2                                  # (B, N, H4)
    hT = jnp.transpose(h, (0, 2, 1))                   # (B, H4, N)
    y = hT + (hT @ wc.T + bc)                          # channel_proj over nodes
    yp = jnp.transpose(y, (0, 2, 1))                   # (B, N, H4)
    out = yp @ wo.T + bo                               # (B, N, O)
    return jnp.transpose(out, (0, 2, 1))               # (B, O, N)


if __name__ == "__main__":
    B, input_dim, hid_dim, output_dim, num_node = 2, 16, 32, 8, 4

    key = jax.random.PRNGKey(0)
    kx, kp = jax.random.split(key)
    # PyTorch-convention input: (B, input_dim, num_node)
    x = jax.random.normal(kx, (B, input_dim, num_node), dtype=jnp.float32)
    params = init_params(kp, input_dim, hid_dim, output_dim, num_node)

    # One-time weight repack (hoisted out of the jitted forward).
    prepped = prepare_params(params, batch=B)

    out = jax.block_until_ready(ieblock_forward(x, prepped))

    ref = ieblock_reference(x, params)
    assert out.shape == (B, output_dim, num_node), out.shape
    assert jnp.allclose(out, ref, atol=1e-4, rtol=1e-4), "mismatch vs reference"

    print("KERNEL_OK")
</pallas_src>

<mosaic_0001>
module attributes {stable_mosaic.version = 11 : i64} {
  func.func @ieblock_kernel(%arg0: i32, %arg1: memref<16x8xf32, #tpu.memory_space<vmem>>, %arg2: memref<32x16xf32, #tpu.memory_space<vmem>>, %arg3: memref<32x1xf32, #tpu.memory_space<vmem>>, %arg4: memref<8x32xf32, #tpu.memory_space<vmem>>, %arg5: memref<8x1xf32, #tpu.memory_space<vmem>>, %arg6: memref<8x8xf32, #tpu.memory_space<vmem>>, %arg7: memref<1x8xf32, #tpu.memory_space<vmem>>, %arg8: memref<8x8xf32, #tpu.memory_space<vmem>>, %arg9: memref<8x1xf32, #tpu.memory_space<vmem>>, %arg10: memref<8x8xf32, #tpu.memory_space<vmem>>) attributes {dimension_semantics = [#tpu.dimension_semantics<parallel>], iteration_bounds = array<i64: 1>, scalar_prefetch = 0 : i64, scratch_operands = 0 : i64, tpu.core_type = #tpu.core_type<tc>, window_params = [{transform_indices = @transform_0, window_bounds = array<i64: 16, 8>}, {pipeline_mode = #tpu.pipeline_mode<synchronous>, transform_indices = @transform_1, window_bounds = array<i64: 32, 16>}, {pipeline_mode = #tpu.pipeline_mode<synchronous>, transform_indices = @transform_2, window_bounds = array<i64: 32, 1>}, {pipeline_mode = #tpu.pipeline_mode<synchronous>, transform_indices = @transform_3, window_bounds = array<i64: 8, 32>}, {pipeline_mode = #tpu.pipeline_mode<synchronous>, transform_indices = @transform_4, window_bounds = array<i64: 8, 1>}, {pipeline_mode = #tpu.pipeline_mode<synchronous>, transform_indices = @transform_5, window_bounds = array<i64: 8, 8>}, {pipeline_mode = #tpu.pipeline_mode<synchronous>, transform_indices = @transform_6, window_bounds = array<i64: 1, 8>}, {pipeline_mode = #tpu.pipeline_mode<synchronous>, transform_indices = @transform_7, window_bounds = array<i64: 8, 8>}, {pipeline_mode = #tpu.pipeline_mode<synchronous>, transform_indices = @transform_8, window_bounds = array<i64: 8, 1>}, {transform_indices = @transform_9, window_bounds = array<i64: 8, 8>}]} {
    %c0 = arith.constant 0 : index
    %c0_0 = arith.constant 0 : index
    %0 = vector.load %arg1[%c0, %c0_0] : memref<16x8xf32, #tpu.memory_space<vmem>>, vector<16x8xf32>
    %c0_1 = arith.constant 0 : index
    %c0_2 = arith.constant 0 : index
    %1 = vector.load %arg2[%c0_1, %c0_2] : memref<32x16xf32, #tpu.memory_space<vmem>>, vector<32x16xf32>
    %cst = arith.constant dense<0.000000e+00> : vector<32x8xf32>
    %2 = tpu.matmul %1, %0, %cst {dimension_numbers = #tpu.dot_dimension_numbers<[1], [0], [0], [1], [0, 0, 1, 1], [], []>} : vector<32x16xf32>, vector<16x8xf32>, vector<32x8xf32> -> vector<32x8xf32>
    %c0_3 = arith.constant 0 : index
    %c0_4 = arith.constant 0 : index
    %3 = vector.load %arg3[%c0_3, %c0_4] : memref<32x1xf32, #tpu.memory_space<vmem>>, vector<32x1xf32>
    %4 = vector.broadcast %3 : vector<32x1xf32> to vector<32x8xf32>
    %5 = arith.addf %2, %4 : vector<32x8xf32>
    %cst_5 = arith.constant 0.00999999977 : f32
    %6 = vector.broadcast %cst_5 : f32 to vector<32x8xf32>
    %7 = arith.mulf %6, %5 : vector<32x8xf32>
    %8 = arith.maximumf %5, %7 : vector<32x8xf32>
    %c0_6 = arith.constant 0 : index
    %c0_7 = arith.constant 0 : index
    %9 = vector.load %arg4[%c0_6, %c0_7] : memref<8x32xf32, #tpu.memory_space<vmem>>, vector<8x32xf32>
    %cst_8 = arith.constant dense<0.000000e+00> : vector<8x8xf32>
    %10 = tpu.matmul %9, %8, %cst_8 {dimension_numbers = #tpu.dot_dimension_numbers<[1], [0], [0], [1], [0, 0, 1, 1], [], []>} : vector<8x32xf32>, vector<32x8xf32>, vector<8x8xf32> -> vector<8x8xf32>
    %c0_9 = arith.constant 0 : index
    %c0_10 = arith.constant 0 : index
    %11 = vector.load %arg5[%c0_9, %c0_10] : memref<8x1xf32, #tpu.memory_space<vmem>>, vector<8x1xf32>
    %12 = vector.broadcast %11 : vector<8x1xf32> to vector<8x8xf32>
    %13 = arith.addf %10, %12 : vector<8x8xf32>
    %c0_11 = arith.constant 0 : index
    %c0_12 = arith.constant 0 : index
    %14 = vector.load %arg6[%c0_11, %c0_12] : memref<8x8xf32, #tpu.memory_space<vmem>>, vector<8x8xf32>
    %cst_13 = arith.constant dense<0.000000e+00> : vector<8x8xf32>
    %15 = tpu.matmul %13, %14, %cst_13 {dimension_numbers = #tpu.dot_dimension_numbers<[1], [0], [0], [1], [0, 0, 1, 1], [], []>} : vector<8x8xf32>, vector<8x8xf32>, vector<8x8xf32> -> vector<8x8xf32>
    %c0_14 = arith.constant 0 : index
    %c0_15 = arith.constant 0 : index
    %16 = vector.load %arg7[%c0_14, %c0_15] : memref<1x8xf32, #tpu.memory_space<vmem>>, vector<1x8xf32>
    %17 = vector.broadcast %16 : vector<1x8xf32> to vector<8x8xf32>
    %18 = arith.addf %15, %17 : vector<8x8xf32>
    %c0_16 = arith.constant 0 : index
    %c0_17 = arith.constant 0 : index
    %19 = vector.load %arg8[%c0_16, %c0_17] : memref<8x8xf32, #tpu.memory_space<vmem>>, vector<8x8xf32>
    %cst_18 = arith.constant dense<0.000000e+00> : vector<8x8xf32>
    %20 = tpu.matmul %19, %18, %cst_18 {dimension_numbers = #tpu.dot_dimension_numbers<[1], [0], [0], [1], [0, 0, 1, 1], [], []>} : vector<8x8xf32>, vector<8x8xf32>, vector<8x8xf32> -> vector<8x8xf32>
    %c0_19 = arith.constant 0 : index
    %c0_20 = arith.constant 0 : index
    %21 = vector.load %arg9[%c0_19, %c0_20] : memref<8x1xf32, #tpu.memory_space<vmem>>, vector<8x1xf32>
    %22 = vector.broadcast %21 : vector<8x1xf32> to vector<8x8xf32>
    %23 = arith.addf %20, %22 : vector<8x8xf32>
    %c0_21 = arith.constant 0 : index
    %c0_22 = arith.constant 0 : index
    %24 = vector.load %arg10[%c0_21, %c0_22] : memref<8x8xf32, #tpu.memory_space<vmem>>, vector<8x8xf32>
    tpu.vector_store %arg10[%c0_21, %c0_22], %23 {strides = array<i32>} : memref<8x8xf32, #tpu.memory_space<vmem>>, vector<8x8xf32>,
    return
  }
  func.func @transform_0(%arg0: i32) -> (i32, i32) {
    %c0_i32 = arith.constant 0 : i32
    %c0_i32_0 = arith.constant 0 : i32
    return %c0_i32, %arg0 : i32, i32
  }
  func.func @transform_1(%arg0: i32) -> (i32, i32) {
    %c0_i32 = arith.constant 0 : i32
    %c0_i32_0 = arith.constant 0 : i32
    %c0_i32_1 = arith.constant 0 : i32
    return %c0_i32, %c0_i32_0 : i32, i32
  }
  func.func @transform_2(%arg0: i32) -> (i32, i32) {
    %c0_i32 = arith.constant 0 : i32
    %c0_i32_0 = arith.constant 0 : i32
    %c0_i32_1 = arith.constant 0 : i32
    return %c0_i32, %c0_i32_0 : i32, i32
  }
  func.func @transform_3(%arg0: i32) -> (i32, i32) {
    %c0_i32 = arith.constant 0 : i32
    %c0_i32_0 = arith.constant 0 : i32
    %c0_i32_1 = arith.constant 0 : i32
    return %c0_i32, %c0_i32_0 : i32, i32
  }
  func.func @transform_4(%arg0: i32) -> (i32, i32) {
    %c0_i32 = arith.constant 0 : i32
    %c0_i32_0 = arith.constant 0 : i32
    %c0_i32_1 = arith.constant 0 : i32
    return %c0_i32, %c0_i32_0 : i32, i32
  }
  func.func @transform_5(%arg0: i32) -> (i32, i32) {
    %c0_i32 = arith.constant 0 : i32
    %c0_i32_0 = arith.constant 0 : i32
    %c0_i32_1 = arith.constant 0 : i32
    return %c0_i32, %c0_i32_0 : i32, i32
  }
  func.func @transform_6(%arg0: i32) -> (i32, i32) {
    %c0_i32 = arith.constant 0 : i32
    %c0_i32_0 = arith.constant 0 : i32
    %c0_i32_1 = arith.constant 0 : i32
    return %c0_i32, %c0_i32_0 : i32, i32
  }
  func.func @transform_7(%arg0: i32) -> (i32, i32) {
    %c0_i32 = arith.constant 0 : i32
    %c0_i32_0 = arith.constant 0 : i32
    %c0_i32_1 = arith.constant 0 : i32
    return %c0_i32, %c0_i32_0 : i32, i32
  }
  func.func @transform_8(%arg0: i32) -> (i32, i32) {
    %c0_i32 = arith.constant 0 : i32
    %c0_i32_0 = arith.constant 0 : i32
    %c0_i32_1 = arith.constant 0 : i32
    return %c0_i32, %c0_i32_0 : i32, i32
  }
  func.func @transform_9(%arg0: i32) -> (i32, i32) {
    %c0_i32 = arith.constant 0 : i32
    %c0_i32_0 = arith.constant 0 : i32
    return %c0_i32, %arg0 : i32, i32
  }
}

</mosaic_0001>

<bundles_post_ra>
// kernel: ieblock_forward.1
= control target key start
LH: loop header
LB: loop body
LE: loop exit
PB: predicated region body
PF: predicated region fallthrough
CT: control target
= control target key end

     0   :  { %vm62_vm0 = vcmask 130048   ;;  %v486_v3 = vmov 0   ;;  %v487_v14 = vmov 0.0|0.0   ;;  %vm488_vm1 = vmmov 0   ;;  %s601_s0 = inlined_call_operand.vmem [shape: f32[16,8], index: 0, kind: input, shape index: {}]   ;;  %s602_s1 = inlined_call_operand.vmem [shape: f32[32,16], index: 1, kind: input, shape index: {}]   ;;  %s603_s2 = inlined_call_operand.vmem [shape: f32[32,1], index: 2, kind: input, shape index: {}]   ;;  %s604_s4 = inlined_call_operand.vmem [shape: f32[8,1], index: 4, kind: input, shape index: {}]   ;;  %s605_s8 = inlined_call_operand.vmem [shape: f32[8,1], index: 8, kind: input, shape index: {}]   ;;  %s606_s5 = inlined_call_operand.vmem [shape: f32[8,8], index: 5, kind: input, shape index: {}]   ;;  %s607_s3 = inlined_call_operand.vmem [shape: f32[8,32], index: 3, kind: input, shape index: {}]   ;;  %s608_s6 = inlined_call_operand.vmem [shape: f32[1,8], index: 6, kind: input, shape index: {}]   ;;  %s609_s7 = inlined_call_operand.vmem [shape: f32[8,8], index: 7, kind: input, shape index: {}]   ;;  %s610_s9 = inlined_call_operand.vmem [shape: f32[8,8], index: 9, kind: output, shape index: {}]  }
   0x1   :  { %v32_v0 = vld [vmem:[%s601_s0] sm:$0xff]  ;;  %v33_v1 = vld [vmem:[%s601_s0 + $0x8] sm:$0xff]  ;;  %484 = vset.pattern.permute.xlu0 %v486_v3  ;;  %485 = vset.pattern.permute.xlu1 %v486_v3  ;;  %v40_v6 = vld [vmem:[%s603_s2 + $0x10] sm:$0xff]  ;;  %v489_v15 = vmov 0.0   ;;  %vm175_vm2 = vcmask 261120   ;;  %vm257_vm3 = vcmask 64512  }
   0x2   :  { %v34_v2 = vld [vmem:[%s602_s1] sm:$0xff]  ;;  %v470_v4 = vpack.c.bf16 %v33_v1, %v32_v0  ;;  %v35_v7 = vld [vmem:[%s602_s1 + $0x8] sm:$0xff]  ;;  %54 = vperm.xlu1 %485, %v40_v6   ;;  %v36_v9 = vld [vmem:[%s602_s1 + $0x10] sm:$0xff]  ;;  %474 = vmatprep.subr.bf16.mxu1 %v487_v14 }
   0x3   :  { %443 = vmatprep.mubr.msk.f32.mxu0 %vm62_vm0, %v34_v2  ;;  %v38_v5 = vld [vmem:[%s603_s2] sm:$0xff]  ;;  %v39_v8 = vld [vmem:[%s603_s2 + $0x8] sm:$0xff]  ;;  %v41_v10 = vld [vmem:[%s603_s2 + $0x18] sm:$0xff]  ;;  %457 = vmatprep.mubr.msk.f32.mxu1 %vm488_vm1, %v489_v15 }
   0x4   :  { %471 = vmatprep.subr.bf16.mxu0 %v470_v4  ;;  %44 = vperm.xlu0 %484, %v38_v5   ;;  %v37_v11 = vld [vmem:[%s602_s1 + $0x18] sm:$0xff]  ;;  %v169_v12 = vld [vmem:[%s604_s4] sm:$0xff] }
   0x5   :  { %473 = vmatpush3.bf16.msra.mxu0 %v470_v4  ;;  %v332_v13 = vld [vmem:[%s605_s8] sm:$0xff] }
   0x6   :  { %59 = vperm.xlu1 %485, %v41_v10   ;;  %460 = vmatprep.subr.mxu0 %v489_v15  ;;  %v249_v16 = vld [vmem:[%s606_s5] sm:$0xff] }
   0x7   :  { %v168_v39 = vld [vmem:[%s607_s3] sm:$0xff] }
   0x8   :  { %444 = vmatmul.mubr.msk.f32.vlgmr.msra.gmra.mrb[0].mxu0 %vm62_vm0, %v35_v7  ;;  %49 = vperm.xlu0 %484, %v39_v8   ;;  %v421_v44 = vld [vmem:[%s608_s6] ss:$0 sm:$0xff] }
   0x9   :  { %446 = vmatprep.mubr.msk.f32.mxu0 %vm62_vm0, %v36_v9  ;;  %461 = vmatpush3.msra.mxu0 %v249_v16  ;;  %v331_v48 = vld [vmem:[%s609_s7] sm:$0xff] }
   0xa   :  { %335 = vperm.xlu1 %485, %v332_v13  }
   0xc   :  { %447 = vmatmul.mubr.msk.f32.gmra.mrb[2].mxu0 %vm62_vm0, %v37_v11  ;;  %172 = vperm.xlu0 %484, %v169_v12  }
   0xd   :  { %462 = vmatprep.mubr.msk.f32.mxu0 %vm488_vm1, %v489_v15 }
  0x81   :  { %v55_v18 = vpop.permute.xlu1 %54 }
  0x83   :  { %v45_v17 = vpop.permute.xlu0 %44 }
  0x85   :  { %v60_v25 = vpop.permute.xlu1 %59 }
  0x87   :  { %v50_v19 = vpop.permute.xlu0 %49 }
  0x89   :  { %v336_v49 = vpop.permute.xlu1 %335 }
  0x8b   :  { %v173_v40 = vpop.permute.xlu0 %172 }
  0xdb   :  { %v445_v20 = vpop.f32.mrb[0].mxu0 }
  0xdc   :  { %v147_v21 = vadd.f32 %v445_v20, %v50_v19  ;;  %v141_v22 = vpop.f32.mrb[1].mxu0 }
  0xdd   :  { %v142_v23 = vadd.f32 %v141_v22, %v45_v17 }
  0xde   :  { %v161_v24 = vmul.f32 0.01, %v147_v21 }
  0xdf   :  { %v160_v26 = vmul.f32 0.01, %v142_v23  ;;  %v448_v27 = vpop.f32.mrb[2].mxu0 }
  0xe0   :  { %v165_v28 = vmax.f32 %v147_v21, %v161_v24  ;;  %v157_v29 = vadd.f32 %v448_v27, %v60_v25  ;;  %v151_v30 = vpop.f32.mrb[3].mxu0 }
  0xe1   :  { %v164_v31 = vmax.f32 %v142_v23, %v160_v26  ;;  %v152_v32 = vadd.f32 %v151_v30, %v55_v18 }
  0xe2   :  { %v163_v33 = vmul.f32 0.01, %v157_v29 }
  0xe3   :  { %v162_v34 = vmul.f32 0.01, %v152_v32  ;;  %v475_v35 = vpack.c.bf16 %v165_v28, %v164_v31 }
  0xe4   :  { %v167_v36 = vmax.f32 %v157_v29, %v163_v33 }
  0xe5   :  { %v166_v37 = vmax.f32 %v152_v32, %v162_v34  ;;  %476 = vmatpush3.bf16.msra.mxu1 %v475_v35 }
  0xe6   :  { %477 = vmatprep.subr.bf16.mxu1 %v487_v14 }
  0xe7   :  { %v478_v38 = vpack.c.bf16 %v167_v36, %v166_v37 }
  0xe9   :  { %479 = vmatpush3.bf16.msra.mxu1 %v478_v38 }
  0xea   :  { %465 = vmatprep.subr.mxu1 %v489_v15 }
  0xec   :  { %458 = vmatmul.mubr.msk.f32.vlgmr.msra.gmra.mrb[0].mxu1 %vm175_vm2, %v168_v39 }
  0xed   :  { %467 = vmatprep.mubr.msk.f32.mxu1 %vm488_vm1, %v489_v15 }
 0x1bf   :  { %v245_v41 = vpop.f32.mrb[0].mxu1 }
 0x1c0   :  { %v246_v42 = vadd.f32 %v245_v41, %v173_v40  ;;  %v459_v43 = vpop.f32.mrb[1].mxu1 }
 0x1c2   :  { %463 = vmatmul.mubr.msk.f32.vlgmr.msra.gmra.mrb[4].mxu0 %vm257_vm3, %v246_v42 }
 0x295   :  { %v327_v45 = vpop.f32.mrb[4].mxu0 }
 0x296   :  { %v328_v46 = vadd.f32 %v421_v44, %v327_v45  ;;  %v464_v47 = vpop.f32.mrb[5].mxu0 }
 0x298   :  { %466 = vmatpush3.msra.mxu1 %v328_v46 }
 0x299   :  { %468 = vmatmul.mubr.msk.f32.vlgmr.msra.gmra.mrb[2].mxu1 %vm257_vm3, %v331_v48 }
 0x36c   :  { %v407_v50 = vpop.f32.mrb[2].mxu1 }
 0x36d   :  { %v408_v51 = vadd.f32 %v407_v50, %v336_v49  ;;  %v469_v52 = vpop.f32.mrb[3].mxu1 }
 0x36f   :  { %411 = vst.msk [vmem:[%s610_s9] sm:$0xff] %vm257_vm3, %v408_v51 }

</bundles_post_ra>
